<compile_context>
chip_gen: v7x
topology: tpu7x:2x2x1
jax: 0.10.0
libtpu: 0.0.40
codegen_flags: <defaults>
</compile_context>

<pallas_src>
import jax
import jax.numpy as jnp
from jax.experimental import pallas as pl
from jax.experimental.pallas import tpu as pltpu

LANE = 128


# ----------------------------------------------------------------------------
# Pallas kernels
# ----------------------------------------------------------------------------
def _mm_bias_kernel(w_ref, x_ref, b_ref, o_ref):
    # (Cout, K) @ (K, Pp) + bias -> (Cout, Pp)   (Pp is a multiple of 128)
    acc = jnp.dot(w_ref[...], x_ref[...], preferred_element_type=jnp.float32)
    o_ref[...] = (acc + b_ref[...]).astype(o_ref.dtype)


def _make_conv_bn_pool_kernel(n_batch, hp, wp, windows, np_real, eps=1e-5):
    """Conv matmul + bias + BatchNorm (batch stats) + MaxPool/MaxUnpool fusion.

    Operates in the (Cout, Pp) matmul layout; columns are ordered (n, h, w),
    the first `np_real` lanes are valid, the remaining lanes are zero padding.
    Pool windows are disjoint (kernel == stride), so each spatial position is
    written by at most one window; uncovered / non-max positions stay 0, which
    is exactly unpool(pool(x)).
    """
    plane = hp * wp

    def kernel(w_ref, x_ref, b_ref, g_ref, be_ref, o_ref):
        acc = jnp.dot(w_ref[...], x_ref[...], preferred_element_type=jnp.float32)
        acc = acc + b_ref[...]

        lane = jax.lax.broadcasted_iota(jnp.int32, acc.shape, 1)
        valid = lane < np_real

        # --- BatchNorm2d, training mode (biased batch statistics), masked to
        #     the real N*H*W columns so the lane padding does not bias stats ---
        inv_cnt = 1.0 / float(np_real)
        mean = jnp.sum(jnp.where(valid, acc, 0.0), axis=1, keepdims=True) * inv_cnt
        xc = jnp.where(valid, acc - mean, 0.0)
        var = jnp.sum(xc * xc, axis=1, keepdims=True) * inv_cnt
        y = xc * jax.lax.rsqrt(var + eps) * g_ref[...] + be_ref[...]

        # --- fused MaxPool2d(return_indices=True) + MaxUnpool2d ---
        lane_f = lane.astype(jnp.float32)
        big = jnp.float32(acc.shape[1])          # larger than any lane index
        out = jnp.zeros_like(y)
        for n in range(n_batch):
            base = n * plane
            for (h0, h1, w0, w1) in windows:
                # window lanes = union of contiguous runs, one per spatial row
                runs = [(base + h * wp + w0, base + h * wp + w1)
                        for h in range(h0, h1)]
                lo, hi = runs[0]
                wmask = (lane >= lo) & (lane < hi)
                for lo, hi in runs[1:]:
                    wmask = wmask | ((lane >= lo) & (lane < hi))
                wmax = jnp.max(jnp.where(wmask, y, -jnp.inf), axis=1, keepdims=True)
                ismax = wmask & (y == wmax)
                # PyTorch keeps the FIRST max in scan order -> smallest index
                first = jnp.min(jnp.where(ismax, lane_f, big), axis=1, keepdims=True)
                keep = ismax & (lane_f == first)
                out = jnp.where(keep, y, out)
        o_ref[...] = out.astype(o_ref.dtype)

    return kernel


# ----------------------------------------------------------------------------
# pallas_call wrappers
# ----------------------------------------------------------------------------
def _full_spec(shape):
    return pl.BlockSpec(shape, lambda i: (0,) * len(shape))


def _pad_lanes(a):
    """Zero-pad the last (lane) dim up to a multiple of 128."""
    p = a.shape[-1]
    pp = ((p + LANE - 1) // LANE) * LANE
    if pp != p:
        a = jnp.pad(a, ((0, 0), (0, pp - p)))
    return a, p


def _mm_bias(w2d, x2d_padded, bias_col):
    cout, k = w2d.shape
    pp = x2d_padded.shape[1]
    return pl.pallas_call(
        _mm_bias_kernel,
        out_shape=jax.ShapeDtypeStruct((cout, pp), jnp.float32),
        grid=(1,),
        in_specs=[_full_spec((cout, k)),
                  _full_spec((k, pp)),
                  _full_spec((cout, 1))],
        out_specs=_full_spec((cout, pp)),
        compiler_params=pltpu.CompilerParams(dimension_semantics=("arbitrary",)),
    )(w2d, x2d_padded, bias_col)


# ----------------------------------------------------------------------------
# Layer glue (im2col, pixel shuffle, padding) — layout plumbing only
# ----------------------------------------------------------------------------
def _im2col(x, kh, kw, stride, pad):
    n, c, h, w = x.shape
    hout = (h + 2 * pad - kh) // stride + 1
    wout = (w + 2 * pad - kw) // stride + 1
    xp = jnp.pad(x, ((0, 0), (0, 0), (pad, pad), (pad, pad)))
    cols = []
    for i in range(kh):
        for j in range(kw):
            cols.append(xp[:, :,
                           i:i + stride * (hout - 1) + 1:stride,
                           j:j + stride * (wout - 1) + 1:stride])
    patches = jnp.stack(cols, axis=2)                       # (N, C, KH*KW, Ho, Wo)
    patches = patches.reshape(n, c * kh * kw, hout * wout)  # (N, K, P)
    patches = patches.transpose(1, 0, 2).reshape(c * kh * kw, n * hout * wout)
    return patches, hout, wout                              # (K, N*P), cols=(n,h,w)


def conv2d(x, w, b, stride, pad):
    # w: (Cout, Cin, KH, KW) -- PyTorch Conv2d layout
    cout, cin, kh, kw = w.shape
    n = x.shape[0]
    patches, hout, wout = _im2col(x, kh, kw, stride, pad)
    xp, p_real = _pad_lanes(patches)
    out = _mm_bias(w.reshape(cout, cin * kh * kw), xp, b.reshape(cout, 1))
    return out[:, :p_real].reshape(cout, n, hout, wout).transpose(1, 0, 2, 3)


def conv_bn_pool_unpool(x, w, b, gamma, beta, stride, pad, pool_k, pool_s, pool_p):
    """conv3 + BatchNorm + MaxPool/MaxUnpool in ONE pallas_call.

    Returns (slab, hp, wp): slab is (Cout, Pp) in (n, h, w) lane order,
    zero-padded lanes, ready to feed the sub-pixel ConvTranspose matmul.
    """
    cout, cin, kh, kw = w.shape
    n = x.shape[0]
    patches, hp, wp = _im2col(x, kh, kw, stride, pad)
    xp, p_real = _pad_lanes(patches)

    # static, clipped pooling windows (kernel == stride -> disjoint windows)
    assert pool_k <= pool_s
    gh = (hp + 2 * pool_p - pool_k) // pool_s + 1
    gw = (wp + 2 * pool_p - pool_k) // pool_s + 1
    # MaxUnpool2d default output size must equal the pooling input size
    assert (gh - 1) * pool_s - 2 * pool_p + pool_k == hp
    assert (gw - 1) * pool_s - 2 * pool_p + pool_k == wp
    windows = []
    for g in range(gh):
        h0, h1 = max(0, g * pool_s - pool_p), min(hp, g * pool_s - pool_p + pool_k)
        for gg in range(gw):
            w0, w1 = max(0, gg * pool_s - pool_p), min(wp, gg * pool_s - pool_p + pool_k)
            if h0 < h1 and w0 < w1:
                windows.append((h0, h1, w0, w1))

    kern = _make_conv_bn_pool_kernel(n, hp, wp, windows, p_real)
    k = cin * kh * kw
    pp = xp.shape[1]
    slab = pl.pallas_call(
        kern,
        out_shape=jax.ShapeDtypeStruct((cout, pp), jnp.float32),
        grid=(1,),
        in_specs=[_full_spec((cout, k)),
                  _full_spec((k, pp)),
                  _full_spec((cout, 1)),
                  _full_spec((cout, 1)),
                  _full_spec((cout, 1))],
        out_specs=_full_spec((cout, pp)),
        compiler_params=pltpu.CompilerParams(dimension_semantics=("arbitrary",)),
    )(w.reshape(cout, k), xp, b.reshape(cout, 1),
      gamma.reshape(cout, 1), beta.reshape(cout, 1))
    return slab, hp, wp


def conv_transpose2d_subpixel_slab(x2d_padded, n, h, w, wt, b, stride, pad, out_pad):
    """ConvTranspose2d with kernel == stride (sub-pixel formulation).

    Input is a lane-padded (Cin, N*H*W) slab, columns ordered (n, h, w),
    padded lanes zero. One dense matmul, then a pixel-shuffle in XLA glue.
    """
    cin, cout, kh, kw = wt.shape
    assert kh == stride and kw == stride
    w_r = wt.transpose(1, 2, 3, 0).reshape(cout * kh * kw, cin)   # rows=(co,dh,dw)
    b_rep = jnp.repeat(b, kh * kw).reshape(cout * kh * kw, 1)
    p_real = n * h * w
    y = _mm_bias(w_r, x2d_padded, b_rep)[:, :p_real]              # (Cout*k*k, N*H*W)
    # pixel shuffle: y[(co,dh,dw),(n,h,w)] -> full[n, co, h*s+dh, w*s+dw]
    y = y.reshape(cout, kh, kw, n, h, w)
    full = y.transpose(3, 0, 4, 1, 5, 2).reshape(n, cout, h * kh, w * kw)
    hf, wf = h * kh, w * kw
    core = full[:, :, pad:hf - pad, pad:wf - pad]
    if out_pad > 0:
        # output_padding rows/cols of a ConvTranspose receive only the bias
        bcast = b.reshape(1, cout, 1, 1)
        rows = jnp.broadcast_to(bcast, (n, cout, out_pad, core.shape[3]))
        core = jnp.concatenate([core, rows], axis=2)
        cols = jnp.broadcast_to(bcast, (n, cout, core.shape[2], out_pad))
        core = jnp.concatenate([core, cols], axis=3)
    return core


def conv_transpose2d(x, wt, b, stride, pad, out_pad):
    # wt: (Cin, Cout, KH, KW) -- PyTorch ConvTranspose2d layout
    cin, cout, kh, kw = wt.shape
    n, _, h, w = x.shape
    if stride == kh == kw:
        # sub-pixel path: no zero-dilation, no 9x wasted MACs
        x2d = x.transpose(1, 0, 2, 3).reshape(cin, n * h * w)
        x2d, _ = _pad_lanes(x2d)
        return conv_transpose2d_subpixel_slab(x2d, n, h, w, wt, b, stride, pad, out_pad)
    # general / stride-1 path: equivalent convolution with flipped kernel
    if stride > 1:
        hd, wd = (h - 1) * stride + 1, (w - 1) * stride + 1
        xd = jnp.zeros((n, cin, hd, wd), x.dtype).at[:, :, ::stride, ::stride].set(x)
    else:
        xd = x
    ph, pw = kh - 1 - pad, kw - 1 - pad
    xd = jnp.pad(xd, ((0, 0), (0, 0), (ph, ph + out_pad), (pw, pw + out_pad)))
    w_conv = jnp.flip(wt, axis=(2, 3)).transpose(1, 0, 2, 3)      # (Cout, Cin, KH, KW)
    return conv2d(xd, w_conv, b, stride=1, pad=0)


# ----------------------------------------------------------------------------
# Forward pass
# ----------------------------------------------------------------------------
def depth_encoder_forward(x, p):
    n = x.shape[0]
    # encoder: Conv(s3,p1) -> Conv(s1,p1) -> [Conv(s3,p1) + BN + pool/unpool] fused
    x = conv2d(x, p["w1"], p["b1"], stride=3, pad=1)
    x = conv2d(x, p["w2"], p["b2"], stride=1, pad=1)
    slab, hp, wp = conv_bn_pool_unpool(x, p["w3"], p["b3"], p["gamma"], p["beta"],
                                       stride=3, pad=1, pool_k=3, pool_s=3, pool_p=1)
    # decoder: first ConvT consumes the fused slab directly (no NCHW round trip)
    x = conv_transpose2d_subpixel_slab(slab, n, hp, wp, p["dw1"], p["db1"],
                                       stride=3, pad=1, out_pad=0)
    x = conv_transpose2d(x, p["dw2"], p["db2"], stride=1, pad=1, out_pad=0)
    x = conv_transpose2d(x, p["dw3"], p["db3"], stride=3, pad=0, out_pad=1)
    return x


# ----------------------------------------------------------------------------
# Main
# ----------------------------------------------------------------------------
if __name__ == "__main__":
    in_channel, out_channel = 4, 16          # small instantiation of DepthEncoder
    N, H, W = 2, 28, 28

    key = jax.random.PRNGKey(0)
    keys = jax.random.split(key, 16)

    def init(k, shape, scale=0.1):
        return scale * jax.random.normal(k, shape, jnp.float32)

    params = {
        # encoder Conv2d weights: (Cout, Cin, 3, 3)
        "w1": init(keys[0], (32, in_channel, 3, 3)), "b1": init(keys[1], (32,)),
        "w2": init(keys[2], (64, 32, 3, 3)),         "b2": init(keys[3], (64,)),
        "w3": init(keys[4], (out_channel, 64, 3, 3)), "b3": init(keys[5], (out_channel,)),
        # BatchNorm2d(out_channel) — training-mode batch statistics
        "gamma": 1.0 + init(keys[6], (out_channel,)),
        "beta": init(keys[7], (out_channel,)),
        # decoder ConvTranspose2d weights: (Cin, Cout, 3, 3)
        "dw1": init(keys[8], (out_channel, 64, 3, 3)),  "db1": init(keys[9], (64,)),
        "dw2": init(keys[10], (64, 32, 3, 3)),          "db2": init(keys[11], (32,)),
        "dw3": init(keys[12], (32, in_channel, 3, 3)),  "db3": init(keys[13], (in_channel,)),
    }

    x = jax.random.normal(keys[15], (N, in_channel, H, W), jnp.float32)

    y = depth_encoder_forward(x, params)
    jax.block_until_ready(y)

    # shape trace: 28 -conv s3-> 10 -conv s1-> 10 -conv s3-> 4 -pool/unpool-> 4
    #              -convT s3 p1-> 10 -convT s1 p1-> 10 -convT s3 p0 op1-> 31
    assert y.shape == (N, in_channel, 31, 31), y.shape
    assert bool(jnp.all(jnp.isfinite(y)))
    print("KERNEL_OK")
</pallas_src>

<mosaic_0001>
module attributes {stable_mosaic.version = 11 : i64} {
  func.func @_mm_bias_kernel(%arg0: i32, %arg1: memref<32x36xf32, #tpu.memory_space<vmem>>, %arg2: memref<36x256xf32, #tpu.memory_space<vmem>>, %arg3: memref<32x1xf32, #tpu.memory_space<vmem>>, %arg4: memref<32x256xf32, #tpu.memory_space<vmem>>) attributes {dimension_semantics = [#tpu.dimension_semantics<arbitrary>], iteration_bounds = array<i64: 1>, scalar_prefetch = 0 : i64, scratch_operands = 0 : i64, tpu.core_type = #tpu.core_type<tc>, window_params = [{pipeline_mode = #tpu.pipeline_mode<synchronous>, transform_indices = @transform_0, window_bounds = array<i64: 32, 36>}, {pipeline_mode = #tpu.pipeline_mode<synchronous>, transform_indices = @transform_1, window_bounds = array<i64: 36, 256>}, {pipeline_mode = #tpu.pipeline_mode<synchronous>, transform_indices = @transform_2, window_bounds = array<i64: 32, 1>}, {pipeline_mode = #tpu.pipeline_mode<synchronous>, transform_indices = @transform_3, window_bounds = array<i64: 32, 256>}]} {
    %c0 = arith.constant 0 : index
    %c0_0 = arith.constant 0 : index
    %0 = vector.load %arg1[%c0, %c0_0] : memref<32x36xf32, #tpu.memory_space<vmem>>, vector<32x36xf32>
    %c0_1 = arith.constant 0 : index
    %c0_2 = arith.constant 0 : index
    %1 = vector.load %arg2[%c0_1, %c0_2] : memref<36x256xf32, #tpu.memory_space<vmem>>, vector<36x256xf32>
    %cst = arith.constant dense<0.000000e+00> : vector<32x256xf32>
    %2 = tpu.matmul %0, %1, %cst {dimension_numbers = #tpu.dot_dimension_numbers<[1], [0], [0], [1], [0, 0, 1, 1], [], []>} : vector<32x36xf32>, vector<36x256xf32>, vector<32x256xf32> -> vector<32x256xf32>
    %c0_3 = arith.constant 0 : index
    %c0_4 = arith.constant 0 : index
    %3 = vector.load %arg3[%c0_3, %c0_4] : memref<32x1xf32, #tpu.memory_space<vmem>>, vector<32x1xf32>
    %4 = vector.broadcast %3 : vector<32x1xf32> to vector<32x256xf32>
    %5 = arith.addf %2, %4 : vector<32x256xf32>
    %c0_5 = arith.constant 0 : index
    %c0_6 = arith.constant 0 : index
    %6 = vector.load %arg4[%c0_5, %c0_6] : memref<32x256xf32, #tpu.memory_space<vmem>>, vector<32x256xf32>
    tpu.vector_store %arg4[%c0_5, %c0_6], %5 {strides = array<i32>} : memref<32x256xf32, #tpu.memory_space<vmem>>, vector<32x256xf32>,
    return
  }
  func.func @transform_0(%arg0: i32) -> (i32, i32) {
    %c0_i32 = arith.constant 0 : i32
    %c0_i32_0 = arith.constant 0 : i32
    %c0_i32_1 = arith.constant 0 : i32
    return %c0_i32, %c0_i32_0 : i32, i32
  }
  func.func @transform_1(%arg0: i32) -> (i32, i32) {
    %c0_i32 = arith.constant 0 : i32
    %c0_i32_0 = arith.constant 0 : i32
    %c0_i32_1 = arith.constant 0 : i32
    return %c0_i32, %c0_i32_0 : i32, i32
  }
  func.func @transform_2(%arg0: i32) -> (i32, i32) {
    %c0_i32 = arith.constant 0 : i32
    %c0_i32_0 = arith.constant 0 : i32
    %c0_i32_1 = arith.constant 0 : i32
    return %c0_i32, %c0_i32_0 : i32, i32
  }
  func.func @transform_3(%arg0: i32) -> (i32, i32) {
    %c0_i32 = arith.constant 0 : i32
    %c0_i32_0 = arith.constant 0 : i32
    %c0_i32_1 = arith.constant 0 : i32
    return %c0_i32, %c0_i32_0 : i32, i32
  }
}

</mosaic_0001>

<bundles_post_ra>
// kernel: tpu_custom_call.1
= control target key start
LH: loop header
LB: loop body
LE: loop exit
PB: predicated region body
PF: predicated region fallthrough
CT: control target
= control target key end

     0   :  { %8 = vsyncpa [#allocation3], 0  ;;  %s361_s0 = inlined_call_operand.vmem [shape: f32[32,36], index: 0, kind: input, shape index: {}]   ;;  %s362_s1 = inlined_call_operand.hbm [shape: f32[36,256], index: 1, kind: input, shape index: {}]   ;;  %s363_s2 = inlined_call_operand.vmem [shape: f32[32,1], index: 2, kind: input, shape index: {}]   ;;  %s364_s3 = inlined_call_operand.hbm [shape: f32[32,256], index: 3, kind: output, shape index: {}]  }
   0x1   :  { %9 = vsyncpa [#allocation4], 0  ;;  %s277_s12 = smov [#allocation2]   ;;  %s229_s16 = scalar_lea.hbm %s362_s1, 1280 }
   0x2   :  { %s17_s13 = sshll.u32 %s277_s12, 4  ;;  %p230_p0 = scmp.ne.s32.totalorder %s362_s1, %s229_s16  ;;  %s18_s13 = int_to_ptr.vmem [resolvable:$true] %s17_s13 }
   0x3   :  { %p233_p1 = scmp.lt.u32.totalorder %s229_s16, %s362_s1 }
   0x5   :  { %p235_p2 = pnand %p233_p1, %p230_p0 }
   0x7   :  { %238 = shalt.err (!%p235_p2)
}
   0x8   :  { %s239_s21 = scalar_lea.vmem %s18_s13, 1280  ;;  %p244_p4 = scmp.lt.s32.totalorder %s18_s13, %s18_s13 }
   0x9   :  { %p240_p3 = scmp.ne.s32.totalorder %s18_s13, %s239_s21  ;;  %p245_p5 = scmp.lt.s32.totalorder %s239_s21, %s239_s21 }
   0xb   :  { %p246_p6 = por %p245_p5, %p244_p4 }
   0xd   :  { %p247_p7 = pnand %p246_p6, %p240_p3 }
   0xf   :  { %250 = shalt.err (!%p247_p7)
}
  0x10   :  { %s278_s22 = smov 256   ;;  %s279_s23 = smov 16  }
  0x11   :  { %23 = dma.hbm_to_vmem [thread:$0]  %s362_s1, 1280, %s18_s13, [#allocation3], %s278_s22, %s278_s22, %s279_s23  }
  0x12   :  { %273 = dma.done.wait [#allocation3], 1280  }
  0x13   :  { %274 = vsyncadd [#allocation3], 4294966016  ;;  %v280_v0 = vmov 0.0   ;;  %v281_v1 = vmov 0   ;;  %v34_v2 = vld [vmem:[#allocation2 + $0x8] sm:$0xff]  ;;  %v36_v3 = vld [vmem:[#allocation2 + $0x18] sm:$0xff] }
  0x14   :  { %151 = vmatprep.mubr.f32.mxu0 %v280_v0  ;;  %163 = vmatprep.mubr.f32.mxu1 %v280_v0  ;;  %v33_v4 = vld [vmem:[#allocation2] sm:$0xff]  ;;  %v207_v5 = vpack.c.bf16 %v36_v3, %v34_v2  ;;  %v35_v6 = vld [vmem:[#allocation2 + $0x10] sm:$0xff]  ;;  %v38_v7 = vld [vmem:[#allocation2 + $0x28] sm:$0xff]  ;;  %vm80_vm0 = vcmask 1043456   ;;  %vm67_vm1 = vcmask 293888   ;;  %s282_s13 = smov [#allocation5]  }
  0x15   :  { %228 = vset.pattern.permute.xlu1 %v281_v1  ;;  %227 = vset.pattern.permute.xlu0 %v281_v1  ;;  %v40_v8 = vld [vmem:[#allocation2 + $0x38] sm:$0xff]  ;;  %v209_v9 = vpack.c.bf16 %v35_v6, %v33_v4  ;;  %v37_v11 = vld [vmem:[#allocation2 + $0x20] sm:$0xff]  ;;  %v39_v12 = vld [vmem:[#allocation2 + $0x30] sm:$0xff]  ;;  %s189_s14 = sshll.u32 %s282_s13, 4  ;;  %s190_s14 = int_to_ptr.vmem [resolvable:$true] %s189_s14 }
  0x16   :  { %v211_v10 = vpack.c.bf16 %v40_v8, %v38_v7  ;;  %208 = vmatprep.subr.bf16.mxu0 %v207_v5  ;;  %215 = vmatprep.subr.bf16.mxu1 %v207_v5  ;;  %v213_v13 = vpack.c.bf16 %v39_v12, %v37_v11  ;;  %v45_v14 = vld [vmem:[%s363_s2 + $0x10] sm:$0xff]  ;;  %v43_v15 = vld [vmem:[%s363_s2] sm:$0xff]  ;;  %v42_v16 = vld [vmem:[#allocation2 + $0x48] sm:$0xf]  ;;  %p256_p9 = scmp.lt.s32.totalorder %s190_s14, %s190_s14 }
  0x17   :  { %210 = vmatpush1.bf16.msra.mxu0 %v209_v9  ;;  %218 = vmatpush1.bf16.msra.mxu1 %v209_v9  ;;  %v46_v17 = vld [vmem:[%s363_s2 + $0x18] sm:$0xff]  ;;  %v44_v18 = vld [vmem:[%s363_s2 + $0x8] sm:$0xff]  ;;  %v41_v19 = vld [vmem:[#allocation2 + $0x40] sm:$0xf] }
  0x18   :  { %212 = vmatprep.subr.bf16.mxu0 %v211_v10  ;;  %216 = vmatprep.subr.bf16.mxu1 %v211_v10  ;;  %v29_v20 = vld [vmem:[%s361_s0] sm:$0xff]  ;;  %v31_v21 = vld [vmem:[%s361_s0 + $0x10] sm:$0xff]  ;;  %v30_v22 = vld [vmem:[%s361_s0 + $0x8] sm:$0xff] }
  0x19   :  { %59 = vperm.xlu1 %228, %v45_v14   ;;  %49 = vperm.xlu0 %227, %v43_v15   ;;  %v32_v23 = vld [vmem:[%s361_s0 + $0x18] sm:$0xff]  ;;  %s251_s0 = scalar_lea.vmem %s190_s14, 1024 }
  0x1a   :  { %p252_p8 = scmp.ne.s32.totalorder %s190_s14, %s251_s0  ;;  %p257_p10 = scmp.lt.s32.totalorder %s251_s0, %s251_s0 }
  0x1b   :  { %214 = vmatpush1.bf16.msra.mxu0 %v213_v13  ;;  %219 = vmatpush1.bf16.msra.mxu1 %v213_v13 }
  0x1c   :  { %201 = vmatprep.subr.msk.mxu0 %vm80_vm0, %v42_v16  ;;  %217 = vmatprep.subr.msk.mxu1 %vm80_vm0, %v42_v16  ;;  %p258_p11 = por %p257_p10, %p256_p9 }
  0x1d   :  { %64 = vperm.xlu1 %228, %v46_v17   ;;  %54 = vperm.xlu0 %227, %v44_v18  }
  0x1e   :  { %p259_p12 = pnand %p258_p11, %p252_p8 }
  0x1f   :  { %202 = vmatpush1.msk.msra.mxu0 %vm80_vm0, %v41_v19  ;;  %220 = vmatpush1.msk.msra.mxu1 %vm80_vm0, %v41_v19 }
  0x20   :  { %203 = vmatmul.mubr.msk.f32.vlgmr.msra.gmra.mrb[0].mxu0 %vm67_vm1, %v29_v20  ;;  %205 = vmatmul.mubr.msk.f32.vlgmr.msra.gmra.mrb[0].mxu1 %vm67_vm1, %v31_v21 }
  0x21   :  { %157 = vmatprep.mubr.f32.mxu0 %v280_v0  ;;  %169 = vmatprep.mubr.f32.mxu1 %v280_v0 }
  0x24   :  { %204 = vmatmul.mubr.msk.f32.gmra.mrb[2].mxu0 %vm67_vm1, %v30_v22  ;;  %206 = vmatmul.mubr.msk.f32.gmra.mrb[2].mxu1 %vm67_vm1, %v32_v23 }
  0x98   :  { %v60_v24 = vpop.permute.xlu1 %59  ;;  %v50_v25 = vpop.permute.xlu0 %49 }
  0x9c   :  { %v65_v34 = vpop.permute.xlu1 %64  ;;  %v55_v35 = vpop.permute.xlu0 %54 }
  0xf3   :  { %v153_v26 = vpop.f32.mrb[0].mxu0  ;;  %v165_v27 = vpop.f32.mrb[0].mxu1 }
  0xf4   :  { %v154_v28 = vadd.f32 %v153_v26, %v50_v25  ;;  %v166_v29 = vadd.f32 %v165_v27, %v60_v24  ;;  %v155_v30 = vpop.f32.mrb[1].mxu0  ;;  %v167_v31 = vpop.f32.mrb[1].mxu1 }
  0xf5   :  { %v156_v32 = vadd.f32 %v155_v30, %v50_v25  ;;  %v168_v33 = vadd.f32 %v167_v31, %v60_v24 }
  0xf6   :  { %176 = vst [vmem:[#allocation5] sm:$0xff] %v154_v28  ;;  %180 = vst [vmem:[#allocation5 + $0x20] sm:$0xff] %v166_v29 }
  0xf7   :  { %177 = vst [vmem:[#allocation5 + $0x8] sm:$0xff] %v156_v32  ;;  %181 = vst [vmem:[#allocation5 + $0x28] sm:$0xff] %v168_v33  ;;  %v159_v36 = vpop.f32.mrb[2].mxu0  ;;  %v171_v37 = vpop.f32.mrb[2].mxu1 }
  0xf8   :  { %v160_v38 = vadd.f32 %v159_v36, %v55_v35  ;;  %v172_v39 = vadd.f32 %v171_v37, %v65_v34  ;;  %v161_v40 = vpop.f32.mrb[3].mxu0  ;;  %v173_v41 = vpop.f32.mrb[3].mxu1 }
  0xf9   :  { %v162_v42 = vadd.f32 %v161_v40, %v55_v35  ;;  %v174_v43 = vadd.f32 %v173_v41, %v65_v34 }
  0xfa   :  { %178 = vst [vmem:[#allocation5 + $0x10] sm:$0xff] %v160_v38  ;;  %182 = vst [vmem:[#allocation5 + $0x30] sm:$0xff] %v172_v39 }
  0xfb   :  { %179 = vst [vmem:[#allocation5 + $0x18] sm:$0xff] %v162_v42  ;;  %183 = vst [vmem:[#allocation5 + $0x38] sm:$0xff] %v174_v43 }
  0xfc   :  { %262 = shalt.err (!%p259_p12)
}
  0xfd   :  { %s263_s17 = scalar_lea.hbm %s364_s3, 1024 }
  0xfe   :  { %p264_p13 = scmp.ne.s32.totalorder %s364_s3, %s263_s17  ;;  %p267_p0 = scmp.lt.u32.totalorder %s263_s17, %s364_s3 }
 0x100   :  { %p269_p1 = pnand %p267_p0, %p264_p13 }
 0x102   :  { %272 = shalt.err (!%p269_p1)
}
 0x103   :  { %195 = dma.vmem_to_hbm [thread:$0]  %s190_s14, 1024, %s364_s3, [#allocation4], %s278_s22, %s278_s22, %s279_s23  }
 0x104   :  { %275 = dma.done.wait [#allocation4], 1024  }
 0x105   :  { %276 = vsyncadd [#allocation4], 4294966272 }
 0x106   :  { %199 = vsyncpa [#allocation3], 1 }
 0x107   :  { %200 = vsyncpa [#allocation4], 1 }

</bundles_post_ra>
